<compile_context>
chip_gen: v7x
topology: tpu7x:2x2x1
jax: 0.10.0
libtpu: 0.0.40
codegen_flags: <defaults>
</compile_context>

<pallas_src>
import functools

import jax
import jax.numpy as jnp
import numpy as np
from jax.experimental import pallas as pl
from jax.experimental.pallas import tpu as pltpu


def _round_up(x, m):
    return ((x + m - 1) // m) * m


def _sigmoid_kernel(x):
    # exp and approx reciprocal both run on the EUP slot (keeps the VPU free).
    return pl.reciprocal(1.0 + jnp.exp(-x), approx=True)


def _make_kernel(TL, Wrows, pad, K, H, Din):
    """One L-tile: rows = sequence/batch positions, lanes = channels.

    comb_ref holds an edge-replicated [h | x] window of Wrows >= TL + 2*pad
    rows, so the replicate-padded Conv1d is K sublane-shifted matmuls.
    """

    def kernel(comb_ref, wrz_ref, wc_ref, brz_ref, bc_ref, out_ref):
        comb = comb_ref[...]                       # (Wrows, H+Din) bf16

        # Fused r/z gate: one MXU call, contraction dim = H + Din, N = 2H.
        rz = jnp.dot(comb, wrz_ref[...],
                     preferred_element_type=jnp.float32) + brz_ref[...]
        rz = _sigmoid_kernel(rz)                   # (Wrows, 2H) f32
        r = rz[:, :H]                              # lane-aligned slice

        # Conv input [r*h | x]: scale the combined window once, cast once.
        scale = jnp.concatenate(
            [r, jnp.ones((Wrows, Din), jnp.float32)], axis=1)
        scaled = (comb.astype(jnp.float32) * scale).astype(jnp.bfloat16)

        # Replicate-padded Conv1d == K tap-shifted matmuls over the window.
        acc = bc_ref[...] + jnp.dot(scaled[0:TL], wc_ref[0],
                                    preferred_element_type=jnp.float32)
        for k in range(1, K):
            acc = acc + jnp.dot(scaled[k:k + TL], wc_ref[k],
                                preferred_element_type=jnp.float32)
        n = _sigmoid_kernel(acc)                   # (TL, H) f32

        z = rz[pad:pad + TL, H:]                   # (TL, H)
        h_body = comb[pad:pad + TL, :H].astype(jnp.float32)
        h_new = (1.0 - z) * n + z * h_body

        # Lane-dense packed output slab [n | h_new] -> (TL, 2H) in bf16.
        out_ref[...] = jnp.concatenate([n, h_new], axis=1).astype(out_ref.dtype)

    return kernel


def _vmem_limit_bytes(TL, Wrows, Cin, H, K):
    """Generous per-tile footprint estimate (double-buffered I/O + f32 temps)."""
    lane = 128
    cin_p = _round_up(Cin, lane)
    wide_p = max(cin_p, _round_up(2 * H, lane))
    win = 2 * Wrows * cin_p * 2                          # bf16 window x2 bufs
    wts = 2 * (Cin * 2 * H + K * Cin * H) * 2 + 2 * (3 * H) * 4
    outb = 2 * TL * _round_up(2 * H, lane) * 2           # bf16 output x2 bufs
    inter = 12 * Wrows * wide_p * 4                      # f32 intermediates
    est = win + wts + outb + inter
    return int(min(max(2 * est, 32 * 1024 * 1024), 48 * 1024 * 1024))


def _run_kernel(comb_win, wrz, wc, brz, bc, *, TL, Wrows, pad, K, H, Din,
                n_tiles):
    Cin = H + Din
    return pl.pallas_call(
        _make_kernel(TL, Wrows, pad, K, H, Din),
        out_shape=jax.ShapeDtypeStruct((n_tiles * TL, 2 * H), jnp.bfloat16),
        grid=(n_tiles,),
        in_specs=[
            pl.BlockSpec((None, Wrows, Cin), lambda i: (i, 0, 0)),  # window
            pl.BlockSpec((Cin, 2 * H), lambda i: (0, 0)),           # W_rz
            pl.BlockSpec((K, Cin, H), lambda i: (0, 0, 0)),         # conv W
            pl.BlockSpec((1, 2 * H), lambda i: (0, 0)),             # b_rz
            pl.BlockSpec((1, H), lambda i: (0, 0)),                 # b_conv
        ],
        out_specs=pl.BlockSpec((TL, 2 * H), lambda i: (i, 0)),
        compiler_params=pltpu.CompilerParams(
            dimension_semantics=("parallel",),
            vmem_limit_bytes=_vmem_limit_bytes(TL, Wrows, Cin, H, K)),
    )(comb_win, wrz, wc, brz, bc)


def prepare_params(params, input_dim, hidden_dim, kernel_size,
                   mxu_dtype=jnp.bfloat16):
    """One-time parameter prep (hoist out of the recurrent loop)."""
    W_lin, b_lin, W_conv, b_conv = params
    H, Din = hidden_dim, input_dim
    W_lin = jnp.asarray(W_lin, jnp.float32)      # (2H, Din+H), rows = [r | z]
    b_lin = jnp.asarray(b_lin, jnp.float32)      # (2H,)
    W_conv = jnp.asarray(W_conv, jnp.float32)    # (H, Din+H, K)
    b_conv = jnp.asarray(b_conv, jnp.float32)    # (H,)

    # Reorder input features to the kernel's [h | x] lane order and fuse r/z.
    w_rz = jnp.concatenate([W_lin[:, Din:], W_lin[:, :Din]], axis=1).T  # (Cin,2H)
    wc = jnp.transpose(W_conv, (2, 1, 0))                               # (K,Cin,H)
    wc = jnp.concatenate([wc[:, Din:, :], wc[:, :Din, :]], axis=1)      # [h|x]
    return dict(
        wrz=w_rz.astype(mxu_dtype),              # (Cin, 2H)
        brz=b_lin[None, :],                      # (1, 2H) f32
        wc=wc.astype(mxu_dtype),                 # (K, Cin, H)
        # length-1 conv with replicate padding == matmul with tap-summed W
        wc_sum=wc.sum(0, keepdims=True).astype(mxu_dtype),   # (1, Cin, H)
        bc=b_conv[None, :],                      # (1, H) f32
    )


def _choose_tl(L, H):
    """>= 2 grid steps when possible (megacore + pipeline), scaled with H."""
    cap = 512 if H <= 256 else (256 if H <= 512 else 128)
    tl = _round_up(max(-(-L // 4), 8), 8)
    return min(cap, tl)


def _window(a2d, n_tiles, TL, Wrows, pad):
    """Edge-replicated overlapping windows: (L, C) -> (n_tiles, Wrows, C)."""
    L, C = a2d.shape
    total = (n_tiles - 1) * TL + Wrows
    front, back = pad, total - pad - L
    parts = []
    if front > 0:
        parts.append(jnp.broadcast_to(a2d[:1], (front, C)))
    parts.append(a2d)
    if back > 0:
        parts.append(jnp.broadcast_to(a2d[-1:], (back, C)))
    ap = jnp.concatenate(parts, axis=0) if len(parts) > 1 else a2d
    wins = [ap[i * TL:i * TL + Wrows] for i in range(n_tiles)]
    return jnp.stack(wins, axis=0)


@functools.partial(jax.jit,
                   static_argnames=("input_dim", "hidden_dim", "kernel_size"))
def conv1d_grucell_v3(x, cur_state, prep, *, input_dim, hidden_dim,
                      kernel_size):
    """Forward pass mirroring Conv1d_GRUcell_v3.forward (prep = prepare_params)."""
    c, h = cur_state
    x = jnp.asarray(x)
    h = jnp.asarray(h)
    H, Din = hidden_dim, input_dim

    # Mirror `x.squeeze(0).shape[0] == input_dim` (squeeze(0) no-op unless dim0==1).
    sq_shape = x.shape[1:] if x.shape[0] == 1 else x.shape
    mark = 1 if sq_shape[0] == input_dim else 0

    if mark == 1:
        x2d = x[0].T                       # (L, Din)
        h2d = h[0].T                       # (L, H)
        K = kernel_size
        wc = prep["wc"]
    else:
        x2d = x[..., 0]                    # (B, Din)
        h2d = h[..., 0]                    # (B, H)
        K = 1                              # length-1 conv folded into one tap
        wc = prep["wc_sum"]

    L = x2d.shape[0]
    pad = K // 2
    TL = _choose_tl(L, H)
    n_tiles = -(-L // TL)
    Wrows = _round_up(TL + 2 * pad, 8)

    # Single combined [h | x] bf16 window (one input DMA stream per tile).
    comb2d = jnp.concatenate([h2d, x2d], axis=1).astype(jnp.bfloat16)
    comb_win = _window(comb2d, n_tiles, TL, Wrows, pad)

    packed = _run_kernel(comb_win, prep["wrz"], wc, prep["brz"], prep["bc"],
                         TL=TL, Wrows=Wrows, pad=pad, K=K, H=H, Din=Din,
                         n_tiles=n_tiles)
    packed = packed[:L].astype(jnp.float32)
    n2d, hnew2d = packed[:, :H], packed[:, H:]

    if mark == 1:
        y = n2d.T[None]                    # (1, H, L)
        h_new = hnew2d.T[None]             # (1, H, L)
    else:
        y = n2d[..., None]                 # (B, H, 1)
        h_new = hnew2d[..., None]          # (B, H, 1)
    return y, (c, h_new)


# ----------------------------------------------------------------------------
# Plain-JAX f32 reference (both branches) for verification.
# ----------------------------------------------------------------------------
def _sigmoid_ref(x):
    return 1.0 / (1.0 + jnp.exp(-x))


def _reference_forward(x, h, params, input_dim, hidden_dim, kernel_size):
    W_lin, b_lin, W_conv, b_conv = params
    sq_shape = x.shape[1:] if x.shape[0] == 1 else x.shape
    mark = 1 if sq_shape[0] == input_dim else 0
    if mark == 1:
        X, Hm = x[0].T, h[0].T
    else:
        X, Hm = x[..., 0], h[..., 0]
    comb1 = jnp.concatenate([X, Hm], axis=1)
    lin = jnp.dot(comb1, W_lin.T, precision=jax.lax.Precision.HIGHEST) + b_lin
    r = _sigmoid_ref(lin[:, :hidden_dim])
    z = _sigmoid_ref(lin[:, hidden_dim:])
    comb2 = jnp.concatenate([X, r * Hm], axis=1)
    if mark == 1:
        pad = kernel_size // 2
        inp_pad = jnp.pad(comb2.T[None], ((0, 0), (0, 0), (pad, pad)),
                          mode='edge')
        cc_n = jax.lax.conv_general_dilated(
            inp_pad, W_conv, window_strides=(1,), padding='VALID',
            dimension_numbers=('NCH', 'OIH', 'NCH'),
            precision=jax.lax.Precision.HIGHEST) + b_conv[None, :, None]
        n = _sigmoid_ref(cc_n)[0].T
    else:
        cc_n = jnp.dot(comb2, W_conv.sum(axis=-1).T,
                       precision=jax.lax.Precision.HIGHEST) + b_conv
        n = _sigmoid_ref(cc_n)
    h_new = (1.0 - z) * n + z * Hm
    if mark == 1:
        return n.T[None], h_new.T[None]
    return n[..., None], h_new[..., None]


if __name__ == "__main__":
    input_dim, hidden_dim, kernel_size = 4, 32, 3
    L, B = 16, 8

    key = jax.random.PRNGKey(0)
    k1, k2, k3, k4, k5, k6, k7, k8 = jax.random.split(key, 8)

    D = input_dim + hidden_dim
    W_lin = 0.1 * jax.random.normal(k3, (2 * hidden_dim, D), jnp.float32)
    b_lin = 0.1 * jax.random.normal(k4, (2 * hidden_dim,), jnp.float32)
    W_conv = 0.1 * jax.random.normal(k5, (hidden_dim, D, kernel_size),
                                     jnp.float32)
    b_conv = 0.1 * jax.random.normal(k6, (hidden_dim,), jnp.float32)
    params = (W_lin, b_lin, W_conv, b_conv)

    prep = prepare_params(params, input_dim, hidden_dim, kernel_size)

    # mark == 1 branch: x (1, Din, L), h (1, H, L)  -> grid of 2 tiles
    x1 = jax.random.normal(k1, (1, input_dim, L), jnp.float32)
    h1 = jax.random.normal(k2, (1, hidden_dim, L), jnp.float32)
    y1, (_, hn1) = conv1d_grucell_v3(x1, (None, h1), prep,
                                     input_dim=input_dim,
                                     hidden_dim=hidden_dim,
                                     kernel_size=kernel_size)
    jax.block_until_ready((y1, hn1))
    y1_ref, hn1_ref = _reference_forward(x1, h1, params, input_dim,
                                         hidden_dim, kernel_size)
    np.testing.assert_allclose(np.asarray(y1), np.asarray(y1_ref),
                               rtol=1e-2, atol=1e-2)
    np.testing.assert_allclose(np.asarray(hn1), np.asarray(hn1_ref),
                               rtol=1e-2, atol=1e-2)

    # mark == 0 branch: x (B, Din, 1), h (B, H, 1)
    x0 = jax.random.normal(k7, (B, input_dim, 1), jnp.float32)
    h0 = jax.random.normal(k8, (B, hidden_dim, 1), jnp.float32)
    y0, (_, hn0) = conv1d_grucell_v3(x0, (None, h0), prep,
                                     input_dim=input_dim,
                                     hidden_dim=hidden_dim,
                                     kernel_size=kernel_size)
    jax.block_until_ready((y0, hn0))
    y0_ref, hn0_ref = _reference_forward(x0, h0, params, input_dim,
                                         hidden_dim, kernel_size)
    np.testing.assert_allclose(np.asarray(y0), np.asarray(y0_ref),
                               rtol=1e-2, atol=1e-2)
    np.testing.assert_allclose(np.asarray(hn0), np.asarray(hn0_ref),
                               rtol=1e-2, atol=1e-2)

    print("KERNEL_OK")
</pallas_src>

<mosaic_0001>
module attributes {stable_mosaic.version = 11 : i64} {
  func.func @kernel(%arg0: i32, %arg1: memref<1x16x36xbf16, #tpu.memory_space<vmem>>, %arg2: memref<36x64xbf16, #tpu.memory_space<vmem>>, %arg3: memref<3x36x32xbf16, #tpu.memory_space<vmem>>, %arg4: memref<1x64xf32, #tpu.memory_space<vmem>>, %arg5: memref<1x32xf32, #tpu.memory_space<vmem>>, %arg6: memref<8x64xbf16, #tpu.memory_space<vmem>>) attributes {dimension_semantics = [#tpu.dimension_semantics<parallel>], iteration_bounds = array<i64: 2>, scalar_prefetch = 0 : i64, scratch_operands = 0 : i64, tpu.core_type = #tpu.core_type<tc>, window_params = [{transform_indices = @transform_0, window_bounds = array<i64: 1, 16, 36>}, {pipeline_mode = #tpu.pipeline_mode<synchronous>, transform_indices = @transform_1, window_bounds = array<i64: 36, 64>}, {pipeline_mode = #tpu.pipeline_mode<synchronous>, transform_indices = @transform_2, window_bounds = array<i64: 3, 36, 32>}, {pipeline_mode = #tpu.pipeline_mode<synchronous>, transform_indices = @transform_3, window_bounds = array<i64: 1, 64>}, {pipeline_mode = #tpu.pipeline_mode<synchronous>, transform_indices = @transform_4, window_bounds = array<i64: 1, 32>}, {transform_indices = @transform_5, window_bounds = array<i64: 8, 64>}]} {
    %c0 = arith.constant 0 : index
    %c0_0 = arith.constant 0 : index
    %c0_1 = arith.constant 0 : index
    %0 = vector.load %arg1[%c0, %c0_0, %c0_1] : memref<1x16x36xbf16, #tpu.memory_space<vmem>>, vector<1x16x36xbf16>
    %1 = vector.shape_cast %0 : vector<1x16x36xbf16> to vector<16x36xbf16>
    %c0_2 = arith.constant 0 : index
    %c0_3 = arith.constant 0 : index
    %2 = vector.load %arg2[%c0_2, %c0_3] : memref<36x64xbf16, #tpu.memory_space<vmem>>, vector<36x64xbf16>
    %cst = arith.constant dense<0.000000e+00> : vector<16x64xf32>
    %3 = tpu.matmul %1, %2, %cst {dimension_numbers = #tpu.dot_dimension_numbers<[1], [0], [0], [1], [0, 0, 1, 1], [], []>} : vector<16x36xbf16>, vector<36x64xbf16>, vector<16x64xf32> -> vector<16x64xf32>
    %c0_4 = arith.constant 0 : index
    %c0_5 = arith.constant 0 : index
    %4 = vector.load %arg4[%c0_4, %c0_5] : memref<1x64xf32, #tpu.memory_space<vmem>>, vector<1x64xf32>
    %5 = vector.broadcast %4 : vector<1x64xf32> to vector<16x64xf32>
    %6 = arith.addf %3, %5 : vector<16x64xf32>
    %cst_6 = arith.constant 0.000000e+00 : f32
    %7 = vector.broadcast %cst_6 : f32 to vector<16x64xf32>
    %8 = arith.subf %7, %6 : vector<16x64xf32>
    %9 = math.exp %8 : vector<16x64xf32>
    %cst_7 = arith.constant 1.000000e+00 : f32
    %10 = vector.broadcast %cst_7 : f32 to vector<16x64xf32>
    %11 = arith.addf %10, %9 : vector<16x64xf32>
    %12 = tpu.reciprocal %11 {approx = true} : vector<16x64xf32> -> vector<16x64xf32>
    %13 = vector.extract_strided_slice %12 {offsets = [0, 0], sizes = [16, 32], strides = [1, 1]} : vector<16x64xf32> to vector<16x32xf32>
    %cst_8 = arith.constant 1.000000e+00 : f32
    %14 = vector.broadcast %cst_8 : f32 to vector<16x4xf32>
    %15 = tpu.concatenate %13, %14 in 1 : vector<16x32xf32>, vector<16x4xf32> -> vector<16x36xf32>
    %16 = arith.extf %1 : vector<16x36xbf16> to vector<16x36xf32>
    %17 = arith.mulf %16, %15 : vector<16x36xf32>
    %18 = arith.truncf %17 : vector<16x36xf32> to vector<16x36xbf16>
    %c0_9 = arith.constant 0 : index
    %c0_10 = arith.constant 0 : index
    %19 = vector.load %arg5[%c0_9, %c0_10] : memref<1x32xf32, #tpu.memory_space<vmem>>, vector<1x32xf32>
    %20 = vector.extract_strided_slice %18 {offsets = [0, 0], sizes = [8, 36], strides = [1, 1]} : vector<16x36xbf16> to vector<8x36xbf16>
    %c0_11 = arith.constant 0 : index
    %c0_12 = arith.constant 0 : index
    %c0_13 = arith.constant 0 : index
    %21 = vector.load %arg3[%c0_11, %c0_12, %c0_13] : memref<3x36x32xbf16, #tpu.memory_space<vmem>>, vector<1x36x32xbf16>
    %22 = vector.shape_cast %21 : vector<1x36x32xbf16> to vector<36x32xbf16>
    %cst_14 = arith.constant dense<0.000000e+00> : vector<8x32xf32>
    %23 = tpu.matmul %20, %22, %cst_14 {dimension_numbers = #tpu.dot_dimension_numbers<[1], [0], [0], [1], [0, 0, 1, 1], [], []>} : vector<8x36xbf16>, vector<36x32xbf16>, vector<8x32xf32> -> vector<8x32xf32>
    %24 = vector.broadcast %19 : vector<1x32xf32> to vector<8x32xf32>
    %25 = arith.addf %24, %23 : vector<8x32xf32>
    %26 = vector.extract_strided_slice %18 {offsets = [1, 0], sizes = [8, 36], strides = [1, 1]} : vector<16x36xbf16> to vector<8x36xbf16>
    %c1 = arith.constant 1 : index
    %c0_15 = arith.constant 0 : index
    %c0_16 = arith.constant 0 : index
    %27 = vector.load %arg3[%c1, %c0_15, %c0_16] : memref<3x36x32xbf16, #tpu.memory_space<vmem>>, vector<1x36x32xbf16>
    %28 = vector.shape_cast %27 : vector<1x36x32xbf16> to vector<36x32xbf16>
    %cst_17 = arith.constant dense<0.000000e+00> : vector<8x32xf32>
    %29 = tpu.matmul %26, %28, %cst_17 {dimension_numbers = #tpu.dot_dimension_numbers<[1], [0], [0], [1], [0, 0, 1, 1], [], []>} : vector<8x36xbf16>, vector<36x32xbf16>, vector<8x32xf32> -> vector<8x32xf32>
    %30 = arith.addf %25, %29 : vector<8x32xf32>
    %31 = vector.extract_strided_slice %18 {offsets = [2, 0], sizes = [8, 36], strides = [1, 1]} : vector<16x36xbf16> to vector<8x36xbf16>
    %c2 = arith.constant 2 : index
    %c0_18 = arith.constant 0 : index
    %c0_19 = arith.constant 0 : index
    %32 = vector.load %arg3[%c2, %c0_18, %c0_19] : memref<3x36x32xbf16, #tpu.memory_space<vmem>>, vector<1x36x32xbf16>
    %33 = vector.shape_cast %32 : vector<1x36x32xbf16> to vector<36x32xbf16>
    %cst_20 = arith.constant dense<0.000000e+00> : vector<8x32xf32>
    %34 = tpu.matmul %31, %33, %cst_20 {dimension_numbers = #tpu.dot_dimension_numbers<[1], [0], [0], [1], [0, 0, 1, 1], [], []>} : vector<8x36xbf16>, vector<36x32xbf16>, vector<8x32xf32> -> vector<8x32xf32>
    %35 = arith.addf %30, %34 : vector<8x32xf32>
    %cst_21 = arith.constant 0.000000e+00 : f32
    %36 = vector.broadcast %cst_21 : f32 to vector<8x32xf32>
    %37 = arith.subf %36, %35 : vector<8x32xf32>
    %38 = math.exp %37 : vector<8x32xf32>
    %cst_22 = arith.constant 1.000000e+00 : f32
    %39 = vector.broadcast %cst_22 : f32 to vector<8x32xf32>
    %40 = arith.addf %39, %38 : vector<8x32xf32>
    %41 = tpu.reciprocal %40 {approx = true} : vector<8x32xf32> -> vector<8x32xf32>
    %42 = vector.extract_strided_slice %12 {offsets = [1, 32], sizes = [8, 32], strides = [1, 1]} : vector<16x64xf32> to vector<8x32xf32>
    %43 = vector.extract_strided_slice %1 {offsets = [1, 0], sizes = [8, 32], strides = [1, 1]} : vector<16x36xbf16> to vector<8x32xbf16>
    %44 = arith.extf %43 : vector<8x32xbf16> to vector<8x32xf32>
    %cst_23 = arith.constant 1.000000e+00 : f32
    %45 = vector.broadcast %cst_23 : f32 to vector<8x32xf32>
    %46 = arith.subf %45, %42 : vector<8x32xf32>
    %47 = arith.mulf %46, %41 : vector<8x32xf32>
    %48 = arith.mulf %42, %44 : vector<8x32xf32>
    %49 = arith.addf %47, %48 : vector<8x32xf32>
    %50 = tpu.concatenate %41, %49 in 1 : vector<8x32xf32>, vector<8x32xf32> -> vector<8x64xf32>
    %51 = arith.truncf %50 : vector<8x64xf32> to vector<8x64xbf16>
    %c0_24 = arith.constant 0 : index
    %c0_25 = arith.constant 0 : index
    %52 = vector.load %arg6[%c0_24, %c0_25] : memref<8x64xbf16, #tpu.memory_space<vmem>>, vector<8x64xbf16>
    tpu.vector_store %arg6[%c0_24, %c0_25], %51 {strides = array<i32>} : memref<8x64xbf16, #tpu.memory_space<vmem>>, vector<8x64xbf16>,
    return
  }
  func.func @transform_0(%arg0: i32) -> (i32, i32, i32) {
    %c0_i32 = arith.constant 0 : i32
    %c0_i32_0 = arith.constant 0 : i32
    %c0_i32_1 = arith.constant 0 : i32
    return %arg0, %c0_i32, %c0_i32_0 : i32, i32, i32
  }
  func.func @transform_1(%arg0: i32) -> (i32, i32) {
    %c0_i32 = arith.constant 0 : i32
    %c0_i32_0 = arith.constant 0 : i32
    %c0_i32_1 = arith.constant 0 : i32
    return %c0_i32, %c0_i32_0 : i32, i32
  }
  func.func @transform_2(%arg0: i32) -> (i32, i32, i32) {
    %c0_i32 = arith.constant 0 : i32
    %c0_i32_0 = arith.constant 0 : i32
    %c0_i32_1 = arith.constant 0 : i32
    %c0_i32_2 = arith.constant 0 : i32
    return %c0_i32, %c0_i32_0, %c0_i32_1 : i32, i32, i32
  }
  func.func @transform_3(%arg0: i32) -> (i32, i32) {
    %c0_i32 = arith.constant 0 : i32
    %c0_i32_0 = arith.constant 0 : i32
    %c0_i32_1 = arith.constant 0 : i32
    return %c0_i32, %c0_i32_0 : i32, i32
  }
  func.func @transform_4(%arg0: i32) -> (i32, i32) {
    %c0_i32 = arith.constant 0 : i32
    %c0_i32_0 = arith.constant 0 : i32
    %c0_i32_1 = arith.constant 0 : i32
    return %c0_i32, %c0_i32_0 : i32, i32
  }
  func.func @transform_5(%arg0: i32) -> (i32, i32) {
    %c0_i32 = arith.constant 0 : i32
    %c0_i32_0 = arith.constant 0 : i32
    return %arg0, %c0_i32 : i32, i32
  }
}

</mosaic_0001>

<bundles_post_ra>
// kernel: conv1d_grucell_v3.1
= control target key start
LH: loop header
LB: loop body
LE: loop exit
PB: predicated region body
PF: predicated region fallthrough
CT: control target
= control target key end

     0   :  { %s818_s18 = smov 0   ;;  %s917_s0 = inlined_call_operand.vmem [shape: bf16[2,16,36], index: 0, kind: input, shape index: {}]   ;;  %s918_s1 = inlined_call_operand.vmem [shape: bf16[36,64], index: 1, kind: input, shape index: {}]   ;;  %s919_s2 = inlined_call_operand.vmem [shape: bf16[3,36,32], index: 2, kind: input, shape index: {}]   ;;  %s920_s3 = inlined_call_operand.vmem [shape: f32[1,64], index: 3, kind: input, shape index: {}]   ;;  %s921_s4 = inlined_call_operand.vmem [shape: f32[1,32], index: 4, kind: input, shape index: {}]   ;;  %s922_s5 = inlined_call_operand.vmem [shape: bf16[16,64], index: 5, kind: output, shape index: {}]  }
   0x1 LB: > { %s633_s19 = sadd.s32 4294967295, %s783_s18   ;;  %p637_p0 = scmp.ge.s32.totalorder %s783_s18, 1  ;;  %s783_s18 = sphi %s818_s18, %s15_s18  }
   0x2   : > { %p187_p1 = scmp.lt.s32.totalorder %s783_s18, 3 }
   0x4   : > { %p188_p2 = pnand %p637_p0, %p187_p1 }
   0x5   : > { %v751_v0 = vld [vmem:[%s918_s1] sm:$0xff] (!%p188_p2)   ;;  %v785_v1 = vmov (!%p188_p2), 0.0   ;;  %v752_v2 = vld [vmem:[%s918_s1 + $0x8] sm:$0xff] (!%p188_p2)   ;;  %v753_v3 = vld [vmem:[%s918_s1 + $0x10] ss:$0 sps:$4 sm:$0x33] (!%p188_p2)  }
   0x6   : > { %191 = sbr.rel (%p188_p2) target bundleno = 661 (0x295), region = 40  ;;  %689 = vmatprep.subr.bf16.mxu0 (!%p188_p2), %v785_v1  ;;  %709 = vmatprep.subr.bf16.mxu1 (!%p188_p2), %v785_v1  ;;  %vm786_vm0 = vmmov (!%p188_p2), 0   ;;  %p214_p3 = scmp.lt.s32.totalorder (!%p188_p2), %s633_s19, 1  ;;  %vm262_vm1 = vcmask (!%p188_p2), 1041408   ;;  %vm258_vm2 = vcmask (!%p188_p2), 293888   ;;  %v755_v6 = vld [vmem:[%s919_s2] sm:$0xff] (!%p188_p2)  }
   0x7   : > { %690 = vmatpush3.bf16.msra.mxu0 (!%p188_p2), %v751_v0  ;;  %695 = vmatprep.mubr.msk.bf16.mxu0 (!%p188_p2), %vm786_vm0, %v785_v1  ;;  %v264_v4 = vsel (!%p188_p2), %vm262_vm1, %v753_v3, 0  ;;  %v757_v7 = vld [vmem:[%s919_s2 + $0x14] sm:$0xff] (!%p188_p2)   ;;  %v756_v8 = vld [vmem:[%s919_s2 + $0x8] sm:$0xff] (!%p188_p2)   ;;  %v759_v9 = vld [vmem:[%s919_s2 + $0x1c] sm:$0xff] (!%p188_p2)   ;;  %vm317_vm3 = vcmask (!%p188_p2), 261120   ;;  %vm571_vm4 = vcmask (!%p188_p2), 1046528  }
   0x8   : > { %691 = vmatprep.subr.bf16.mxu0 (!%p188_p2), %v785_v1  ;;  %715 = vmatprep.mubr.msk.bf16.mxu1 (!%p188_p2), %vm786_vm0, %v785_v1  ;;  %v758_v10 = vld [vmem:[%s919_s2 + $0x10] ss:$0 sps:$4 sm:$0x33] (!%p188_p2)   ;;  %v760_v12 = vld [vmem:[%s919_s2 + $0x24] ss:$0 sps:$4 sm:$0x33] (!%p188_p2)  }
   0x9   : > { %710 = vmatpush3.bf16.msra.mxu1 (!%p188_p2), %v757_v7  ;;  %v350_v11 = vsel (!%p188_p2), %vm262_vm1, %v758_v10, 0  ;;  %v430_v13 = vsel (!%p188_p2), %vm262_vm1, %v760_v12, 0  ;;  %v641_v14 = vld [vmem:[%s920_s3] ss:$0 sm:$0xff] (!%p188_p2)  ;;  %v761_v41 = vld [vmem:[%s919_s2 + $0x28] sm:$0xff] (!%p188_p2)   ;;  %v762_v43 = vld [vmem:[%s919_s2 + $0x30] sm:$0xff] (!%p188_p2)  }
   0xa   : > { %711 = vmatprep.subr.bf16.mxu1 (!%p188_p2), %v785_v1  ;;  %v763_v44 = vld [vmem:[%s919_s2 + $0x38] ss:$0 sps:$4 sm:$0x33] (!%p188_p2)   ;;  %v651_v51 = vld [vmem:[%s921_s4] ss:$0 sm:$0xff] (!%p188_p2)  ;;  %vm578_vm5 = vcmask (!%p188_p2), 519168  }
   0xb   : > { %692 = vmatpush3.bf16.msra.mxu0 (!%p188_p2), %v752_v2  ;;  %v500_v45 = vsel (!%p188_p2), %vm262_vm1, %v763_v44, 0 }
   0xc   : > { %693 = vmatprep.subr.bf16.mxu0 (!%p188_p2), %v785_v1 }
   0xd   : > { %s924_s19 = smov (!%p214_p3, %s633_s19), 1  ;;  %712 = vmatpush3.bf16.msra.mxu1 %v759_v9 }
   0xe   : > { %s672_s26 = sshll.u32 %s924_s19, 3  ;;  %713 = vmatprep.subr.bf16.mxu1 %v785_v1  ;;  %s640_s30 = sshll.u32 %s924_s19, 2 }
   0xf   : > { %s218_s29 = scalar_lea.vmem %s917_s0, %s672_s26  ;;  %694 = vmatpush3.bf16.msra.mxu0 %v264_v4  ;;  %s222_s8 = scalar_lea.vmem %s922_s5, %s640_s30 }
  0x10   : > { %v850_v5 = vld [vmem:[%s218_s29] sm:$0xff]   ;;  %699 = vmatprep.subr.bf16.mxu0 %v785_v1  ;;  %s787_s29 = smov 32  }
  0x11   : > { %714 = vmatpush3.bf16.msra.mxu1 %v430_v13  ;;  %v320_v30 = vunpack.c.l.bf16 %v850_v5  ;;  %v321_v31 = vunpack.c.h.bf16 %v850_v5 }
  0x12   : > { %696 = vmatmul.mubr.msk.bf16.vlgmr.msra.gmra.mrb[0].mxu0 %vm258_vm2, %v850_v5  ;;  %719 = vmatprep.subr.bf16.mxu1 %v785_v1 }
  0x13   : > { %705 = vmatprep.mubr.msk.bf16.mxu0 %vm786_vm0, %v785_v1  ;;  %700 = vmatpush3.bf16.msra.mxu0 %v755_v6  ;;  %v746_v0 = vpack.i.bf16 %v321_v31, %v320_v30 }
  0x14   : > { %701 = vmatprep.subr.bf16.mxu0 %v785_v1 }
  0x17   : > { %702 = vmatpush3.bf16.msra.mxu0 %v756_v8 }
  0x18   : > { %703 = vmatprep.subr.bf16.mxu0 %v785_v1 }
  0x1b   : > { %704 = vmatpush3.bf16.msra.mxu0 %v350_v11 }
  0xe5   : > { %v300_v15 = vpop.f32.mrb[0].mxu0 }
  0xe6   : > { %v301_v16 = vadd.f32 %v641_v14, %v300_v15  ;;  %v697_v17 = vpop.f32.mrb[1].mxu0 }
  0xe7   : > { %v303_v18 = vpop.f32.mrb[2].mxu0 }
  0xe8   : > { %v307_v19 = vsub.f32 0.0, %v301_v16  ;;  %v304_v20 = vadd.f32 %v641_v14, %v303_v18  ;;  %v698_v21 = vpop.f32.mrb[3].mxu0 }
  0xea   : > { %v309_v22 = vmul.f32 1.442695, %v307_v19  ;;  %v308_v23 = vsub.f32 0.0, %v304_v20 }
  0xec   : > { %765 = vpow2.f32 %v309_v22  ;;  %v311_v24 = vmul.f32 1.442695, %v308_v23 }
  0xee   : > { %767 = vpow2.f32 %v311_v24 }
  0xf6   : > { %v766_v25 = vpop.eup %765 }
  0xf7   : > { %v313_v26 = vadd.f32 1.0, %v766_v25 }
  0xf8   : > { %v768_v27 = vpop.eup %767 }
  0xf9   : > { %769 = vrcp.f32 %v313_v26  ;;  %v314_v28 = vadd.f32 1.0, %v768_v27 }
  0xfb   : > { %771 = vrcp.f32 %v314_v28 }
 0x103   : > { %v770_v29 = vpop.eup %769 }
 0x104   : > { %v318_v32 = vsel %vm317_vm3, %v770_v29, 1.0  ;;  %v548_v3 = vsub.f32 1.0, %v770_v29 }
 0x105   : > { %v772_v33 = vpop.eup %771  ;;  %v322_v35 = vmul.f32 %v320_v30, %v318_v32 }
 0x106   : > { %v319_v34 = vsel %vm317_vm3, %v772_v33, 1.0  ;;  %v549_v4 = vsub.f32 1.0, %v772_v33 }
 0x107   : > { %v323_v36 = vmul.f32 %v321_v31, %v319_v34 }
 0x109   : > { %v324_v37 = vpack.c.bf16 %v323_v36, %v322_v35 }
 0x10b   : > { %706 = vmatmul.mubr.msk.bf16.vlgmr.msra.gmra.mrb[4].mxu0 %vm258_vm2, %v324_v37  ;;  %v407_v38 = vshll.u32 %v324_v37, 16  ;;  %v405_v39 = vshrl.u32 %v324_v37, 16  ;;  %v480_v46 = vrot.slane %v324_v37, 1 }
 0x10d   : > { %v409_v40 = vrot.slane %v407_v38, 1 }
 0x10f   : > { %v410_v42 = vor.u32 %v409_v40, %v405_v39 }
 0x111   : > { %716 = vmatmul.mubr.msk.bf16.vlgmr.msra.gmra.mrb[0].mxu1 %vm258_vm2, %v410_v42 }
 0x112   : > { %720 = vmatpush3.bf16.msra.mxu1 %v761_v41  ;;  %725 = vmatprep.mubr.msk.bf16.mxu1 %vm786_vm0, %v785_v1 }
 0x113   : > { %721 = vmatprep.subr.bf16.mxu1 %v785_v1 }
 0x116   : > { %722 = vmatpush3.bf16.msra.mxu1 %v762_v43 }
 0x117   : > { %723 = vmatprep.subr.bf16.mxu1 %v785_v1 }
 0x11a   : > { %724 = vmatpush3.bf16.msra.mxu1 %v500_v45 }
 0x11d   : > { %726 = vmatmul.mubr.msk.bf16.vlgmr.msra.gmra.mrb[0].mxu1 %vm258_vm2, %v480_v46 }
 0x1de   : > { %v386_v47 = vpop.f32.mrb[4].mxu0 }
 0x1df   : > { %v707_v48 = vpop.f32.mrb[5].mxu0  ;;  %v398_v52 = vadd.f32 %v651_v51, %v386_v47 }
 0x1e0   : > { %v389_v49 = vpop.f32.mrb[6].mxu0 }
 0x1e1   : > { %v708_v50 = vpop.f32.mrb[7].mxu0 }
 0x1f0   : > { %v536_v53 = vpop.f32.mrb[0].mxu1 }
 0x1f1   : > { %v730_v54 = vadd.f32 %v536_v53, %v398_v52  ;;  %v727_v55 = vpop.f32.mrb[1].mxu1 }
 0x1f2   : > { %v539_v56 = vpop.f32.mrb[2].mxu1 }
 0x1f3   : > { %v543_v57 = vsub.f32 0.0, %v730_v54  ;;  %v728_v58 = vpop.f32.mrb[3].mxu1 }
 0x1f5   : > { %v544_v59 = vmul.f32 1.442695, %v543_v57 }
 0x1f7   : > { %773 = vpow2.f32 %v544_v59 }
 0x201   : > { %v774_v60 = vpop.eup %773 }
 0x202   : > { %v546_v61 = vadd.f32 1.0, %v774_v60 }
 0x204   : > { %775 = vrcp.f32 %v546_v61 }
 0x20e   : > { %v776_v62 = vpop.eup %775 }
 0x20f   : > { %v551_v63 = vrot.slane %v776_v62, 7 }
 0x211   : > { %552 = vrot.lane.b32.xlu0 %v551_v63, %s787_s29 }
 0x215   : > { %747 = vrot.lane.b32.xlu0 %v746_v0, %s787_s29 }
 0x283   : > { %v553_v1 = vpop.permute.xlu0 %552 }
 0x284   : > { %v555_v7 = vmul.f32 %v553_v1, %v548_v3  ;;  %v556_v8 = vmul.f32 %v553_v1, %v549_v4 }
 0x287   : > { %v748_v2 = vpop.permute.xlu0 %747 }
 0x288   : > { %v750_v5 = vunpack.i.h.bf16 %v748_v2  ;;  %v749_v6 = vunpack.i.l.bf16 %v748_v2 }
 0x28a   : > { %v566_v9 = vmul.f32 %v772_v33, %v750_v5  ;;  %v565_v10 = vmul.f32 %v770_v29, %v749_v6 }
 0x28c   : > { %v568_v11 = vadd.f32 %v566_v9, %v556_v8  ;;  %v567_v12 = vadd.f32 %v565_v10, %v555_v7 }
 0x28e   : > { %v573_v13 = vrot.slane %v568_v11, 1  ;;  %v572_v14 = vrot.slane %v567_v12, 1 }
 0x290   : > { %v574_v15 = vsel %vm571_vm4, %v572_v14, %v573_v13 }
 0x291   : > { %v576_v16 = vsel %vm317_vm3, %v776_v62, %v574_v15 }
 0x292   : > { %v577_v17 = vpack.c.bf16 %v576_v16, %v576_v16 }
 0x294   : > { %579 = vst.msk [vmem:[%s222_s8] sm:$0xf] %vm578_vm5, %v577_v17 }
 0x295 PF: > { %s15_s18 = sadd.s32 1, %s783_s18  }
 0x296   : > { %p12_p4 = scmp.ge.s32.totalorder %s15_s18, 4  }
 0x298   :  { %14 = sbr.rel (!%p12_p4) target bundleno = 1 (0x1), region = 72 }

</bundles_post_ra>
